<compile_context>
chip_gen: v7x
topology: tpu7x:2x2x1
jax: 0.10.0
libtpu: 0.0.40
codegen_flags: <defaults>
</compile_context>

<pallas_src>
import functools

import jax
import jax.numpy as jnp
from jax.experimental import pallas as pl
from jax.experimental.pallas import tpu as pltpu

M_POS = 0.9
M_NEG = 0.1
LAMBDA_ = 0.5

_LANES = 512          # lane-dense slab width (multiple of 128)
_MAX_ROW_TILE = 1024  # 1024 x 512 f32 = 2 MiB real payload per buffer


def _round_up(x, m):
    return ((x + m - 1) // m) * m


def _margin_loss_kernel(slab_ref, t_ref, out_ref, acc_ref, *, batch):
    pid = pl.program_id(0)
    last = pl.num_programs(0) - 1

    @pl.when(pid == 0)
    def _init():
        acc_ref[...] = jnp.zeros_like(acc_ref)
        # Target-class correction (once): +max(m_pos - t)^2 - lambda*max(t - m_neg)^2
        t = t_ref[...].astype(jnp.float32)                        # (RT, 128)
        rt, lt = t.shape
        pos = jnp.maximum(M_POS - t, 0.0)
        neg = jnp.maximum(t - M_NEG, 0.0)
        corr = pos * pos - LAMBDA_ * (neg * neg)
        flat_idx = (jax.lax.broadcasted_iota(jnp.int32, (rt, lt), 0) * lt
                    + jax.lax.broadcasted_iota(jnp.int32, (rt, lt), 1))
        corr = jnp.where(flat_idx < batch, corr, 0.0)             # mask pad entries
        acc_ref[:, :lt] += corr.reshape(rt // 8, 8, lt).sum(axis=0)

    # Dense bulk term over the lane-dense slab: lambda * max(x - m_neg, 0)^2.
    # Zero padding contributes exactly 0 -> no per-step masking.
    x = slab_ref[...].astype(jnp.float32)                         # (TR, LANES)
    tr, lanes = x.shape
    h = jnp.maximum(x - M_NEG, 0.0)
    part = (h * h).reshape(tr // 8, 8, lanes).sum(axis=0)         # vadds -> (8, LANES)
    acc_ref[...] += LAMBDA_ * part                                # lambda folded post-reduce

    @pl.when(pid == last)
    def _finalize():
        out_ref[0, 0] = jnp.sum(acc_ref[...])                     # one XLU reduce + SMEM write


def margin_loss(y_pred, y_true, size_average=True):
    """y_pred: [B, C] float (any float dtype), y_true: [B] int class ids."""
    B, C = y_pred.shape
    dtype = jnp.dtype(y_pred.dtype)
    sub = 8 * max(1, 4 // dtype.itemsize)   # sublane packing: 8 (f32) / 16 (bf16) / 32 (i8)

    # Gathered target scores t[b] = y_pred[b, y_true[b]] (labels never enter the
    # kernel), packed into a lane-dense (RT, 128) slab.
    idx = y_true.astype(jnp.int32).reshape(B, 1)
    t = jnp.take_along_axis(y_pred, idx, axis=1)[:, 0]            # (B,)
    rt = _round_up(pl.cdiv(B, 128), sub)
    t_pad = rt * 128 - B
    if t_pad:
        t = jnp.pad(t, (0, t_pad))
    t2 = t.reshape(rt, 128)

    # Lane-dense slab of all scores; zero padding contributes 0 to the bulk term.
    flat = y_pred.reshape(-1)
    r_needed = pl.cdiv(B * C, _LANES)
    tr = min(_MAX_ROW_TILE, _round_up(r_needed, sub))
    r = _round_up(r_needed, tr)
    pad = r * _LANES - B * C
    if pad:
        flat = jnp.pad(flat, (0, pad))
    slab = flat.reshape(r, _LANES)
    grid_b = r // tr

    # VMEM budget: 2 x (tr*512*itemsize) slab buffers (<= 4 MiB f32) + small
    # resident t block + 16 KiB accumulator -> well inside 16/32 MiB scoped
    # defaults on v5e/v6e/v7x, so no vmem_limit_bytes override is needed.
    kernel = functools.partial(_margin_loss_kernel, batch=B)
    total = pl.pallas_call(
        kernel,
        out_shape=jax.ShapeDtypeStruct((1, 1), jnp.float32),
        grid_spec=pltpu.PrefetchScalarGridSpec(
            num_scalar_prefetch=0,
            grid=(grid_b,),
            in_specs=[
                pl.BlockSpec((tr, _LANES), lambda i: (i, 0)),
                pl.BlockSpec((rt, 128), lambda i: (0, 0)),   # resident, fetched once
            ],
            out_specs=pl.BlockSpec(memory_space=pltpu.MemorySpace.SMEM),
            scratch_shapes=[pltpu.VMEM((8, _LANES), jnp.float32)],
        ),
        compiler_params=pltpu.CompilerParams(
            dimension_semantics=("arbitrary",),
        ),
        cost_estimate=pl.CostEstimate(
            flops=4 * B * C + 6 * B,
            transcendentals=0,
            bytes_accessed=(r * _LANES + rt * 128) * dtype.itemsize + 4,
        ),
    )(slab, t2)
    # TODO(synk): on v7x (2 TensorCores) add a leading "parallel" grid axis of
    # size 2 with a per-core output slot and sum the two partials in the
    # wrapper; it has no effect on v5e/v6e (1 TC) so it is left out here.

    total = total[0, 0]
    if size_average:
        return total / (B * C)          # losses.mean() over the (B, C) matrix
    return total                        # raw sum


def margin_loss_ref(y_pred, y_true, size_average=True):
    _, C = y_pred.shape
    y_pred = y_pred.astype(jnp.float32)
    targets = jax.nn.one_hot(y_true, C, dtype=jnp.float32)
    losses = (targets * jnp.maximum(M_POS - y_pred, 0.0) ** 2
              + LAMBDA_ * (1.0 - targets) * jnp.maximum(y_pred - M_NEG, 0.0) ** 2)
    return losses.mean() if size_average else losses.sum()


if __name__ == "__main__":
    key = jax.random.PRNGKey(0)
    k1, k2 = jax.random.split(key)

    B, NUM_CLASSES = 8, 10                       # small shapes: batch=8, 10 classes
    y_pred = jax.random.uniform(k1, (B, NUM_CLASSES), dtype=jnp.float32)
    y_true = jax.random.randint(k2, (B,), 0, NUM_CLASSES, dtype=jnp.int32)

    out_mean = jax.block_until_ready(margin_loss(y_pred, y_true, size_average=True))
    out_sum = jax.block_until_ready(margin_loss(y_pred, y_true, size_average=False))

    ref_mean = margin_loss_ref(y_pred, y_true, size_average=True)
    ref_sum = margin_loss_ref(y_pred, y_true, size_average=False)

    assert jnp.allclose(out_mean, ref_mean, atol=1e-6, rtol=1e-6), (out_mean, ref_mean)
    assert jnp.allclose(out_sum, ref_sum, atol=1e-5, rtol=1e-6), (out_sum, ref_sum)

    print("KERNEL_OK")
</pallas_src>

<mosaic_0001>
module attributes {stable_mosaic.version = 11 : i64} {
  func.func @_margin_loss_kernel(%arg0: i32, %arg1: memref<8x512xf32, #tpu.memory_space<vmem>>, %arg2: memref<8x128xf32, #tpu.memory_space<vmem>>, %arg3: memref<1x1xf32, #tpu.memory_space<smem>>, %arg4: memref<8x512xf32, #tpu.memory_space<vmem>>) attributes {dimension_semantics = [#tpu.dimension_semantics<arbitrary>], iteration_bounds = array<i64: 1>, scalar_prefetch = 0 : i64, scratch_operands = 1 : i64, tpu.core_type = #tpu.core_type<tc>, window_params = [{transform_indices = @transform_0, window_bounds = array<i64: 8, 512>}, {pipeline_mode = #tpu.pipeline_mode<synchronous>, transform_indices = @transform_1, window_bounds = array<i64: 8, 128>}, {transform_indices = @transform_2, window_bounds = array<i64: 1, 1>}]} {
    %c0_i32 = arith.constant 0 : i32
    %0 = arith.cmpi eq, %arg0, %c0_i32 : i32
    %1 = arith.extui %0 : i1 to i32
    %c0_i32_0 = arith.constant 0 : i32
    %2 = arith.cmpi ne, %1, %c0_i32_0 : i32
    scf.if %2 {
      %cst_11 = arith.constant 0.000000e+00 : f32
      %19 = vector.broadcast %cst_11 : f32 to vector<8x512xf32>
      %c0_12 = arith.constant 0 : index
      %c0_13 = arith.constant 0 : index
      %20 = vector.load %arg4[%c0_12, %c0_13] : memref<8x512xf32, #tpu.memory_space<vmem>>, vector<8x512xf32>
      tpu.vector_store %arg4[%c0_12, %c0_13], %19 {strides = array<i32>} : memref<8x512xf32, #tpu.memory_space<vmem>>, vector<8x512xf32>,
      %c0_14 = arith.constant 0 : index
      %c0_15 = arith.constant 0 : index
      %21 = vector.load %arg2[%c0_14, %c0_15] : memref<8x128xf32, #tpu.memory_space<vmem>>, vector<8x128xf32>
      %cst_16 = arith.constant 0.899999976 : f32
      %22 = vector.broadcast %cst_16 : f32 to vector<8x128xf32>
      %23 = arith.subf %22, %21 : vector<8x128xf32>
      %cst_17 = arith.constant 0.000000e+00 : f32
      %24 = vector.broadcast %cst_17 : f32 to vector<8x128xf32>
      %25 = arith.maximumf %23, %24 : vector<8x128xf32>
      %cst_18 = arith.constant 1.000000e-01 : f32
      %26 = vector.broadcast %cst_18 : f32 to vector<8x128xf32>
      %27 = arith.subf %21, %26 : vector<8x128xf32>
      %cst_19 = arith.constant 0.000000e+00 : f32
      %28 = vector.broadcast %cst_19 : f32 to vector<8x128xf32>
      %29 = arith.maximumf %27, %28 : vector<8x128xf32>
      %30 = arith.mulf %25, %25 : vector<8x128xf32>
      %31 = arith.mulf %29, %29 : vector<8x128xf32>
      %cst_20 = arith.constant 5.000000e-01 : f32
      %32 = vector.broadcast %cst_20 : f32 to vector<8x128xf32>
      %33 = arith.mulf %32, %31 : vector<8x128xf32>
      %34 = arith.subf %30, %33 : vector<8x128xf32>
      %35 = tpu.iota {dimensions = array<i32: 0>} : vector<8x128xi32>
      %c128_i32 = arith.constant 128 : i32
      %36 = vector.broadcast %c128_i32 : i32 to vector<8x128xi32>
      %37 = arith.muli %35, %36 : vector<8x128xi32>
      %38 = tpu.iota {dimensions = array<i32: 1>} : vector<8x128xi32>
      %39 = arith.addi %37, %38 : vector<8x128xi32>
      %c8_i32 = arith.constant 8 : i32
      %40 = vector.broadcast %c8_i32 : i32 to vector<8x128xi32>
      %41 = arith.cmpi slt, %39, %40 : vector<8x128xi32>
      %cst_21 = arith.constant 0.000000e+00 : f32
      %42 = vector.broadcast %cst_21 : f32 to vector<8x128xf32>
      %43 = arith.select %41, %34, %42 : vector<8x128xi1>, vector<8x128xf32>
      %c0_22 = arith.constant 0 : index
      %c0_23 = arith.constant 0 : index
      %44 = vector.load %arg4[%c0_22, %c0_23] : memref<8x512xf32, #tpu.memory_space<vmem>>, vector<8x128xf32>
      %45 = vector.shape_cast %43 : vector<8x128xf32> to vector<1x8x128xf32>
      %cst_24 = arith.constant dense<0.000000e+00> : vector<8x128xf32>
      %46 = vector.multi_reduction <add>, %45, %cst_24 [0] : vector<1x8x128xf32> to vector<8x128xf32>
      %47 = arith.addf %44, %46 : vector<8x128xf32>
      %c0_25 = arith.constant 0 : index
      %c0_26 = arith.constant 0 : index
      %48 = vector.load %arg4[%c0_25, %c0_26] : memref<8x512xf32, #tpu.memory_space<vmem>>, vector<8x128xf32>
      tpu.vector_store %arg4[%c0_25, %c0_26], %47 {strides = array<i32>} : memref<8x512xf32, #tpu.memory_space<vmem>>, vector<8x128xf32>,
    } else {
    }
    %c0 = arith.constant 0 : index
    %c0_1 = arith.constant 0 : index
    %3 = vector.load %arg1[%c0, %c0_1] : memref<8x512xf32, #tpu.memory_space<vmem>>, vector<8x512xf32>
    %cst = arith.constant 1.000000e-01 : f32
    %4 = vector.broadcast %cst : f32 to vector<8x512xf32>
    %5 = arith.subf %3, %4 : vector<8x512xf32>
    %cst_2 = arith.constant 0.000000e+00 : f32
    %6 = vector.broadcast %cst_2 : f32 to vector<8x512xf32>
    %7 = arith.maximumf %5, %6 : vector<8x512xf32>
    %8 = arith.mulf %7, %7 : vector<8x512xf32>
    %9 = vector.shape_cast %8 : vector<8x512xf32> to vector<1x8x512xf32>
    %cst_3 = arith.constant dense<0.000000e+00> : vector<8x512xf32>
    %10 = vector.multi_reduction <add>, %9, %cst_3 [0] : vector<1x8x512xf32> to vector<8x512xf32>
    %c0_4 = arith.constant 0 : index
    %c0_5 = arith.constant 0 : index
    %11 = vector.load %arg4[%c0_4, %c0_5] : memref<8x512xf32, #tpu.memory_space<vmem>>, vector<8x512xf32>
    %cst_6 = arith.constant 5.000000e-01 : f32
    %12 = vector.broadcast %cst_6 : f32 to vector<8x512xf32>
    %13 = arith.mulf %12, %10 : vector<8x512xf32>
    %14 = arith.addf %11, %13 : vector<8x512xf32>
    %c0_7 = arith.constant 0 : index
    %c0_8 = arith.constant 0 : index
    %15 = vector.load %arg4[%c0_7, %c0_8] : memref<8x512xf32, #tpu.memory_space<vmem>>, vector<8x512xf32>
    tpu.vector_store %arg4[%c0_7, %c0_8], %14 {strides = array<i32>} : memref<8x512xf32, #tpu.memory_space<vmem>>, vector<8x512xf32>,
    %c0_i32_9 = arith.constant 0 : i32
    %16 = arith.cmpi eq, %arg0, %c0_i32_9 : i32
    %17 = arith.extui %16 : i1 to i32
    %c0_i32_10 = arith.constant 0 : i32
    %18 = arith.cmpi ne, %17, %c0_i32_10 : i32
    scf.if %18 {
      %c0_11 = arith.constant 0 : index
      %c0_12 = arith.constant 0 : index
      %19 = vector.load %arg4[%c0_11, %c0_12] : memref<8x512xf32, #tpu.memory_space<vmem>>, vector<8x512xf32>
      %20 = vector.shape_cast %19 : vector<8x512xf32> to vector<1x8x512xf32>
      %cst_13 = arith.constant dense<0.000000e+00> : vector<1xf32>
      %21 = vector.multi_reduction <add>, %20, %cst_13 [1, 2] : vector<1x8x512xf32> to vector<1xf32>
      %22 = vector.shape_cast %21 : vector<1xf32> to vector<1x1x1xf32>
      %23 = vector.extract %22[0, 0, 0] : f32 from vector<1x1x1xf32>
      %c0_14 = arith.constant 0 : index
      %c0_15 = arith.constant 0 : index
      %24 = memref.load %arg3[%c0_14, %c0_15] : memref<1x1xf32, #tpu.memory_space<smem>>
      memref.store %23, %arg3[%c0_14, %c0_15] : memref<1x1xf32, #tpu.memory_space<smem>>
    } else {
    }
    return
  }
  func.func @transform_0(%arg0: i32) -> (i32, i32) {
    %c0_i32 = arith.constant 0 : i32
    %c0_i32_0 = arith.constant 0 : i32
    return %arg0, %c0_i32 : i32, i32
  }
  func.func @transform_1(%arg0: i32) -> (i32, i32) {
    %c0_i32 = arith.constant 0 : i32
    %c0_i32_0 = arith.constant 0 : i32
    %c0_i32_1 = arith.constant 0 : i32
    return %c0_i32, %c0_i32_0 : i32, i32
  }
  func.func @transform_2(%arg0: i32) -> (i32, i32) {
    %c0_i32 = arith.constant 0 : i32
    %c0_i32_0 = arith.constant 0 : i32
    %c0_i32_1 = arith.constant 0 : i32
    return %c0_i32, %c0_i32_0 : i32, i32
  }
}

</mosaic_0001>

<bundles_post_ra>
// kernel: tpu_custom_call.1
= control target key start
LH: loop header
LB: loop body
LE: loop exit
PB: predicated region body
PF: predicated region fallthrough
CT: control target
= control target key end

     0   :  { %7 = vsyncpa [#allocation4], 0  ;;  %s261_s0 = inlined_call_operand.hbm [shape: f32[8,512], index: 0, kind: input, shape index: {}]   ;;  %s262_s1 = inlined_call_operand.hbm [shape: f32[8,128], index: 1, kind: input, shape index: {}]   ;;  %s263_s2 = inlined_call_operand.hbm [shape: f32[1,1], index: 2, kind: output, shape index: {}]  }
   0x1   :  { %8 = vsyncpa [#allocation7], 0 }
   0x2   :  { %9 = vsyncpa [#allocation5], 0  ;;  %s207_s9 = smov [#allocation3]   ;;  %s208_s11 = smov [#allocation6]  }
   0x3   :  { %s16_s10 = sshll.u32 %s207_s9, 4  ;;  %s26_s12 = sshll.u32 %s208_s11, 4  ;;  %s17_s10 = int_to_ptr.vmem [resolvable:$true] %s16_s10  ;;  %s27_s12 = int_to_ptr.vmem [resolvable:$true] %s26_s12 }
   0x4   :  { %s147_s15 = scalar_lea.hbm %s261_s0, 512 }
   0x5   :  { %p148_p0 = scmp.ne.s32.totalorder %s261_s0, %s147_s15  ;;  %p151_p1 = scmp.lt.u32.totalorder %s147_s15, %s261_s0 }
   0x7   :  { %p153_p2 = pnand %p151_p1, %p148_p0 }
   0x9   :  { %156 = shalt.err (!%p153_p2)
}
   0xa   :  { %s157_s20 = scalar_lea.vmem %s17_s10, 512  ;;  %p162_p4 = scmp.lt.s32.totalorder %s17_s10, %s17_s10 }
   0xb   :  { %p158_p3 = scmp.ne.s32.totalorder %s17_s10, %s157_s20  ;;  %p163_p5 = scmp.lt.s32.totalorder %s157_s20, %s157_s20 }
   0xd   :  { %p164_p6 = por %p163_p5, %p162_p4 }
   0xf   :  { %p165_p7 = pnand %p164_p6, %p158_p3 }
  0x11   :  { %168 = shalt.err (!%p165_p7)
}
  0x12   :  { %19 = dma.hbm_to_vmem [thread:$0]  %s261_s0, 512, %s17_s10, [#allocation4]  }
  0x13   :  { %s169_s25 = scalar_lea.hbm %s262_s1, 128 }
  0x14   :  { %p170_p8 = scmp.ne.s32.totalorder %s262_s1, %s169_s25  ;;  %p173_p9 = scmp.lt.u32.totalorder %s169_s25, %s262_s1 }
  0x16   :  { %p175_p10 = pnand %p173_p9, %p170_p8 }
  0x18   :  { %178 = shalt.err (!%p175_p10)
}
  0x19   :  { %s179_s30 = scalar_lea.vmem %s27_s12, 128  ;;  %p184_p12 = scmp.lt.s32.totalorder %s27_s12, %s27_s12 }
  0x1a   :  { %p180_p11 = scmp.ne.s32.totalorder %s27_s12, %s179_s30  ;;  %p185_p13 = scmp.lt.s32.totalorder %s179_s30, %s179_s30 }
  0x1c   :  { %p186_p0 = por %p185_p13, %p184_p12 }
  0x1e   :  { %p187_p1 = pnand %p186_p0, %p180_p11 }
  0x20   :  { %190 = shalt.err (!%p187_p1)
}
  0x21   :  { %29 = dma.hbm_to_vmem [thread:$0]  %s262_s1, 128, %s27_s12, [#allocation7]  }
  0x22   :  { %201 = dma.done.wait [#allocation4], 512  }
  0x23   :  { %202 = vsyncadd [#allocation4], 4294966784 }
  0x24   :  { %203 = dma.done.wait [#allocation7], 128  }
  0x25   :  { %204 = vsyncadd [#allocation7], 4294967168  ;;  %v53_v0 = vlaneseq  ;;  %v44_v2 = vld [vmem:[#allocation6] sm:$0xff]  ;;  %v66_v6 = vld [vmem:[#allocation3 + $0x8] sm:$0xff]  ;;  %s191_s6 = scalar_lea.hbm %s263_s2, 16 }
  0x26   :  { %v65_v5 = vld [vmem:[#allocation3] sm:$0xff]  ;;  %v45_v7 = vsub.f32 0.9, %v44_v2  ;;  %v137_v8 = vadd.f32 -0.1, %v44_v2  ;;  %v67_v9 = vld [vmem:[#allocation3 + $0x10] sm:$0xff]  ;;  %p192_p2 = scmp.ne.s32.totalorder %s263_s2, %s191_s6  ;;  %p195_p3 = scmp.lt.u32.totalorder %s191_s6, %s263_s2 }
  0x27   :  { %v54_v1 = vshrl.u32 %v53_v0, 7  ;;  %v57_v4 = vand.u32 127, %v53_v0  ;;  %v68_v10 = vld [vmem:[#allocation3 + $0x18] sm:$0xff]  ;;  %v138_v11 = vadd.f32 -0.1, %v65_v5 }
  0x28   :  { %v139_v12 = vadd.f32 -0.1, %v66_v6  ;;  %v46_v13 = vmax.f32 %v45_v7, 0.0  ;;  %v48_v14 = vmax.f32 %v137_v8, 0.0  ;;  %v140_v15 = vadd.f32 -0.1, %v67_v9  ;;  %p197_p4 = pnand %p195_p3, %p192_p2 }
  0x29   :  { %v55_v3 = vmul.u32 128, %v54_v1  ;;  %v141_v16 = vadd.f32 -0.1, %v68_v10  ;;  %v73_v18 = vmax.f32 %v138_v11, 0.0 }
  0x2a   :  { %v74_v19 = vmax.f32 %v139_v12, 0.0  ;;  %v49_v20 = vmul.f32 %v46_v13, %v46_v13  ;;  %v50_v21 = vmul.f32 %v48_v14, %v48_v14  ;;  %v75_v22 = vmax.f32 %v140_v15, 0.0 }
  0x2b   :  { %v58_v17 = vadd.s32 %v57_v4, %v55_v3  ;;  %v76_v23 = vmax.f32 %v141_v16, 0.0  ;;  %v77_v24 = vmul.f32 %v73_v18, %v73_v18 }
  0x2c   :  { %v78_v25 = vmul.f32 %v74_v19, %v74_v19  ;;  %v51_v26 = vmul.f32 0.5, %v50_v21  ;;  %v79_v27 = vmul.f32 %v75_v22, %v75_v22 }
  0x2d   :  { %vm59_vm0 = vcmp.lt.s32.totalorder %v58_v17, 8  ;;  %v89_v28 = vmul.f32 0.5, %v77_v24  ;;  %v80_v30 = vmul.f32 %v76_v23, %v76_v23 }
  0x2e   :  { %v52_v29 = vsub.f32 %v49_v20, %v51_v26  ;;  %v90_v31 = vmul.f32 0.5, %v78_v25  ;;  %v91_v33 = vmul.f32 0.5, %v79_v27 }
  0x2f   :  { %v92_v35 = vmul.f32 0.5, %v80_v30 }
  0x30   :  { %v60_v32 = vsel %vm59_vm0, %v52_v29, 0.0 }
  0x31   :  { %v93_v34 = vadd.f32 %v89_v28, %v60_v32 }
  0x33   :  { %v108_v36 = vadd.f32 %v93_v34, %v90_v31 }
  0x35   :  { %v109_v37 = vadd.f32 %v108_v36, %v91_v33 }
  0x37   :  { %v110_v38 = vadd.f32 %v109_v37, %v92_v35 }
  0x39   :  { %111 = vadd.xlane.f32.xlu0 %v110_v38 }
  0xc6   :  { %v112_v39 = vpop.xlane.xlu0 %111 }
  0xc7   :  { %v113_v40 = vrot.slane %v112_v39, 4 }
  0xc9   :  { %v114_v41 = vadd.f32 %v113_v40, %v112_v39 }
  0xcb   :  { %v115_v42 = vrot.slane %v114_v41, 2 }
  0xcd   :  { %v116_v43 = vadd.f32 %v115_v42, %v114_v41 }
  0xcf   :  { %v117_v44 = vrot.slane %v116_v43, 1 }
  0xd1   :  { %v118_v45 = vadd.f32 %v117_v44, %v116_v43 }
  0xd3   :  { %142 = vpush %v118_v45 }
 0x104   :  { %s143_s1 = spop %142 }
 0x105   :  { %121 = sst [smem:[#allocation8]] %s143_s1 }
 0x106   :  { %200 = shalt.err (!%p197_p4)
}
 0x107   :  { %s209_s11 = smov [#allocation8]  }
 0x108   :  { %129 = dma.smem_to_hbm %s209_s11, 16, %s263_s2, [#allocation5]  }
 0x109   :  { %205 = dma.done.wait [#allocation5], 16  }
 0x10a   :  { %206 = vsyncadd [#allocation5], 4294967280 }
 0x10b   :  { %133 = sfence }
 0x10c   :  { %134 = vsyncpa [#allocation4], 1 }
 0x10d   :  { %135 = vsyncpa [#allocation7], 1 }
 0x10e   :  { %136 = vsyncpa [#allocation5], 1 }

</bundles_post_ra>
